<compile_context>
chip_gen: v7x
topology: tpu7x:2x2x1
jax: 0.10.0
libtpu: 0.0.40
codegen_flags: <defaults>
</compile_context>

<pallas_src>
import functools

import jax
import jax.numpy as jnp
from jax.experimental import pallas as pl
from jax.experimental.pallas import tpu as pltpu


def _whiten_fused_kernel(x_ref, out_ref, *, n, m):
    """One (TB, N*M) block; row i of each batch lives at lanes [i*M, (i+1)*M)."""
    f32 = jnp.float32
    # (M == 1 would divide by zero in the PyTorch reference; guarded here.)
    inv_m1 = 1.0 / float(m - 1) if m > 1 else 1.0

    def row(i):                                        # dense (TB, M) slab
        return x_ref[:, i * m:(i + 1) * m].astype(f32)

    # --- covariance: cov[i][j] = <xc_i, xc_j> / (M-1) as (TB, 1) scalars. ---
    means = [None] * n
    cov = [[None] * n for _ in range(n)]
    for i in range(n):
        ri = row(i)
        means[i] = jnp.mean(ri, axis=-1, keepdims=True)        # (TB, 1)
        xci = ri - means[i]
        for j in range(i + 1):
            xcj = xci if j == i else (row(j) - means[j])
            cov[i][j] = jnp.sum(xci * xcj, axis=-1, keepdims=True) * inv_m1

    # --- unrolled Cholesky (lower) of the (N, N) covariance. ---
    tiny = f32(1e-30)  # pivot clamp: bit-exact on the successful (PD) path.
    L = [[None] * n for _ in range(n)]
    for i in range(n):
        for j in range(i + 1):
            s = cov[i][j]
            for k in range(j):
                s = s - L[i][k] * L[j][k]
            if i == j:
                L[i][j] = jnp.sqrt(jnp.maximum(s, tiny))
            else:
                L[i][j] = s / L[j][j]

    # --- unrolled forward substitution: invL = L^{-1} (lower triangular). ---
    invL = [[None] * n for _ in range(n)]
    for i in range(n):
        invL[i][i] = 1.0 / L[i][i]
        for j in range(i):
            s = L[i][j] * invL[j][j]
            for k in range(j + 1, i):
                s = s + L[i][k] * invL[k][j]
            invL[i][j] = -s * invL[i][i]

    # --- apply: whitened row i = sum_{j<=i} invL[i][j] * xc_j (VPU FMAs). ---
    # TODO(synk): if N grows to >= 8 and the VPU binds on v7x, move the cov
    # and apply contractions onto the idle MXU via einsum instead.
    for i in range(n):
        acc = invL[i][0] * (row(0) - means[0])
        for j in range(1, i + 1):
            acc = acc + invL[i][j] * (row(j) - means[j])
        out_ref[:, i * m:(i + 1) * m] = acc.astype(out_ref.dtype)  # dense store


def _vmem_block_budget_bytes():
    """Per-generation budget for the pipelined (input + output) blocks."""
    try:
        vmem_cap = pltpu.get_tpu_info().vmem_capacity_bytes
    except Exception:
        vmem_cap = 64 * 1024 * 1024
    if vmem_cap >= 128 * 1024 * 1024:     # v5e / v6e: HBM-bound, bigger blocks.
        return 32 * 1024 * 1024
    return 16 * 1024 * 1024               # v7x: only 64 MiB physical VMEM.


def _pick_tb(batch, lanes, budget_bytes):
    """Batch-tile TB and its double-buffered VMEM footprint.

    TB must divide `batch` and be a multiple of 8 (f32 sublane tile) or the
    full batch; prefer leaving >= 2 grid steps (v7x megacore + DMA prefetch).
    """
    def footprint(tb):
        tb_pad = max(8, -(-tb // 8) * 8)          # padded to the sublane tile
        return 2 * 2 * tb_pad * lanes * 4         # dbl-buffer x (in + out) x f32

    cands = [d for d in range(1, batch + 1)
             if batch % d == 0 and (d % 8 == 0 or d == batch)]
    fitting = [d for d in cands if footprint(d) <= budget_bytes] or [min(cands)]
    multi_step = [d for d in fitting if batch // d >= 2]
    tb = max(multi_step) if multi_step else max(fitting)
    return tb, footprint(tb)


def whiten_forward(x, eps=2e-05):
    """x: (B, N, cH, cW) float32 -> whitened (B, N, cH, cW), matching Whiten.forward."""
    del eps  # successful-path semantics only; see TODO at top of file.
    B, N, cH, cW = x.shape
    M = cH * cW
    xf = x.reshape(B, N * M)                      # lane-dense 2-D layout

    budget = _vmem_block_budget_bytes()
    TB, blocks_bytes = _pick_tb(B, N * M, budget)
    vmem_limit = max(32 * 1024 * 1024, blocks_bytes + 8 * 1024 * 1024)

    out = pl.pallas_call(
        functools.partial(_whiten_fused_kernel, n=N, m=M),
        out_shape=jax.ShapeDtypeStruct((B, N * M), x.dtype),
        grid_spec=pltpu.PrefetchScalarGridSpec(
            num_scalar_prefetch=0,
            grid=(B // TB,),
            in_specs=[pl.BlockSpec((TB, N * M), lambda b: (b, 0))],
            out_specs=pl.BlockSpec((TB, N * M), lambda b: (b, 0)),
        ),
        compiler_params=pltpu.CompilerParams(
            dimension_semantics=("parallel",),
            vmem_limit_bytes=vmem_limit),
    )(xf)
    return out.reshape(B, N, cH, cW)


def _whiten_reference(x):
    """Pure-JAX reference matching the PyTorch forward."""
    B, N, cH, cW = x.shape
    xf = x.reshape(B, N, -1)
    mean = jnp.mean(xf, axis=-1, keepdims=True)
    xc = xf - mean
    cov = jnp.einsum("bnm,bkm->bnk", xc, xc) / (xf.shape[-1] - 1)
    L = jnp.linalg.cholesky(cov)
    inv_L = jnp.linalg.inv(L)
    w = jnp.einsum("bnk,bkm->bnm", inv_L, xc)
    return w.reshape(B, N, cH, cW)


if __name__ == "__main__":
    key = jax.random.PRNGKey(0)
    B, N, cH, cW = 2, 4, 16, 16
    x = jax.random.normal(key, (B, N, cH, cW), dtype=jnp.float32)

    out = jax.block_until_ready(whiten_forward(x))
    ref = _whiten_reference(x)

    assert out.shape == (B, N, cH, cW)
    assert jnp.allclose(out, ref, atol=1e-3, rtol=1e-3), "mismatch vs reference"

    print("KERNEL_OK")
</pallas_src>

<mosaic_0001>
module attributes {stable_mosaic.version = 11 : i64} {
  func.func @_whiten_fused_kernel(%arg0: i32, %arg1: memref<2x1024xf32, #tpu.memory_space<vmem>>, %arg2: memref<2x1024xf32, #tpu.memory_space<vmem>>) attributes {dimension_semantics = [#tpu.dimension_semantics<parallel>], iteration_bounds = array<i64: 1>, scalar_prefetch = 0 : i64, scratch_operands = 0 : i64, tpu.core_type = #tpu.core_type<tc>, window_params = [{transform_indices = @transform_0, window_bounds = array<i64: 2, 1024>}, {transform_indices = @transform_1, window_bounds = array<i64: 2, 1024>}]} {
    %c0 = arith.constant 0 : index
    %c0_0 = arith.constant 0 : index
    %0 = vector.load %arg1[%c0, %c0_0] : memref<2x1024xf32, #tpu.memory_space<vmem>>, vector<2x256xf32>
    %cst = arith.constant dense<0.000000e+00> : vector<2xf32>
    %1 = vector.multi_reduction <add>, %0, %cst [1] : vector<2x256xf32> to vector<2xf32>
    %2 = vector.shape_cast %1 : vector<2xf32> to vector<2x1xf32>
    %cst_1 = arith.constant 2.560000e+02 : f32
    %3 = vector.broadcast %cst_1 : f32 to vector<2x1xf32>
    %4 = arith.divf %2, %3 : vector<2x1xf32>
    %5 = vector.broadcast %4 : vector<2x1xf32> to vector<2x256xf32>
    %6 = arith.subf %0, %5 : vector<2x256xf32>
    %7 = arith.mulf %6, %6 : vector<2x256xf32>
    %cst_2 = arith.constant dense<0.000000e+00> : vector<2xf32>
    %8 = vector.multi_reduction <add>, %7, %cst_2 [1] : vector<2x256xf32> to vector<2xf32>
    %9 = vector.shape_cast %8 : vector<2xf32> to vector<2x1xf32>
    %cst_3 = arith.constant 0.00392156886 : f32
    %10 = vector.broadcast %cst_3 : f32 to vector<2x1xf32>
    %11 = arith.mulf %9, %10 : vector<2x1xf32>
    %c0_4 = arith.constant 0 : index
    %c256 = arith.constant 256 : index
    %12 = vector.load %arg1[%c0_4, %c256] : memref<2x1024xf32, #tpu.memory_space<vmem>>, vector<2x256xf32>
    %cst_5 = arith.constant dense<0.000000e+00> : vector<2xf32>
    %13 = vector.multi_reduction <add>, %12, %cst_5 [1] : vector<2x256xf32> to vector<2xf32>
    %14 = vector.shape_cast %13 : vector<2xf32> to vector<2x1xf32>
    %cst_6 = arith.constant 2.560000e+02 : f32
    %15 = vector.broadcast %cst_6 : f32 to vector<2x1xf32>
    %16 = arith.divf %14, %15 : vector<2x1xf32>
    %17 = vector.broadcast %16 : vector<2x1xf32> to vector<2x256xf32>
    %18 = arith.subf %12, %17 : vector<2x256xf32>
    %c0_7 = arith.constant 0 : index
    %c0_8 = arith.constant 0 : index
    %19 = vector.load %arg1[%c0_7, %c0_8] : memref<2x1024xf32, #tpu.memory_space<vmem>>, vector<2x256xf32>
    %20 = vector.broadcast %4 : vector<2x1xf32> to vector<2x256xf32>
    %21 = arith.subf %19, %20 : vector<2x256xf32>
    %22 = arith.mulf %18, %21 : vector<2x256xf32>
    %cst_9 = arith.constant dense<0.000000e+00> : vector<2xf32>
    %23 = vector.multi_reduction <add>, %22, %cst_9 [1] : vector<2x256xf32> to vector<2xf32>
    %24 = vector.shape_cast %23 : vector<2xf32> to vector<2x1xf32>
    %cst_10 = arith.constant 0.00392156886 : f32
    %25 = vector.broadcast %cst_10 : f32 to vector<2x1xf32>
    %26 = arith.mulf %24, %25 : vector<2x1xf32>
    %27 = arith.mulf %18, %18 : vector<2x256xf32>
    %cst_11 = arith.constant dense<0.000000e+00> : vector<2xf32>
    %28 = vector.multi_reduction <add>, %27, %cst_11 [1] : vector<2x256xf32> to vector<2xf32>
    %29 = vector.shape_cast %28 : vector<2xf32> to vector<2x1xf32>
    %cst_12 = arith.constant 0.00392156886 : f32
    %30 = vector.broadcast %cst_12 : f32 to vector<2x1xf32>
    %31 = arith.mulf %29, %30 : vector<2x1xf32>
    %c0_13 = arith.constant 0 : index
    %c512 = arith.constant 512 : index
    %32 = vector.load %arg1[%c0_13, %c512] : memref<2x1024xf32, #tpu.memory_space<vmem>>, vector<2x256xf32>
    %cst_14 = arith.constant dense<0.000000e+00> : vector<2xf32>
    %33 = vector.multi_reduction <add>, %32, %cst_14 [1] : vector<2x256xf32> to vector<2xf32>
    %34 = vector.shape_cast %33 : vector<2xf32> to vector<2x1xf32>
    %cst_15 = arith.constant 2.560000e+02 : f32
    %35 = vector.broadcast %cst_15 : f32 to vector<2x1xf32>
    %36 = arith.divf %34, %35 : vector<2x1xf32>
    %37 = vector.broadcast %36 : vector<2x1xf32> to vector<2x256xf32>
    %38 = arith.subf %32, %37 : vector<2x256xf32>
    %c0_16 = arith.constant 0 : index
    %c0_17 = arith.constant 0 : index
    %39 = vector.load %arg1[%c0_16, %c0_17] : memref<2x1024xf32, #tpu.memory_space<vmem>>, vector<2x256xf32>
    %40 = vector.broadcast %4 : vector<2x1xf32> to vector<2x256xf32>
    %41 = arith.subf %39, %40 : vector<2x256xf32>
    %42 = arith.mulf %38, %41 : vector<2x256xf32>
    %cst_18 = arith.constant dense<0.000000e+00> : vector<2xf32>
    %43 = vector.multi_reduction <add>, %42, %cst_18 [1] : vector<2x256xf32> to vector<2xf32>
    %44 = vector.shape_cast %43 : vector<2xf32> to vector<2x1xf32>
    %cst_19 = arith.constant 0.00392156886 : f32
    %45 = vector.broadcast %cst_19 : f32 to vector<2x1xf32>
    %46 = arith.mulf %44, %45 : vector<2x1xf32>
    %c0_20 = arith.constant 0 : index
    %c256_21 = arith.constant 256 : index
    %47 = vector.load %arg1[%c0_20, %c256_21] : memref<2x1024xf32, #tpu.memory_space<vmem>>, vector<2x256xf32>
    %48 = vector.broadcast %16 : vector<2x1xf32> to vector<2x256xf32>
    %49 = arith.subf %47, %48 : vector<2x256xf32>
    %50 = arith.mulf %38, %49 : vector<2x256xf32>
    %cst_22 = arith.constant dense<0.000000e+00> : vector<2xf32>
    %51 = vector.multi_reduction <add>, %50, %cst_22 [1] : vector<2x256xf32> to vector<2xf32>
    %52 = vector.shape_cast %51 : vector<2xf32> to vector<2x1xf32>
    %cst_23 = arith.constant 0.00392156886 : f32
    %53 = vector.broadcast %cst_23 : f32 to vector<2x1xf32>
    %54 = arith.mulf %52, %53 : vector<2x1xf32>
    %55 = arith.mulf %38, %38 : vector<2x256xf32>
    %cst_24 = arith.constant dense<0.000000e+00> : vector<2xf32>
    %56 = vector.multi_reduction <add>, %55, %cst_24 [1] : vector<2x256xf32> to vector<2xf32>
    %57 = vector.shape_cast %56 : vector<2xf32> to vector<2x1xf32>
    %cst_25 = arith.constant 0.00392156886 : f32
    %58 = vector.broadcast %cst_25 : f32 to vector<2x1xf32>
    %59 = arith.mulf %57, %58 : vector<2x1xf32>
    %c0_26 = arith.constant 0 : index
    %c768 = arith.constant 768 : index
    %60 = vector.load %arg1[%c0_26, %c768] : memref<2x1024xf32, #tpu.memory_space<vmem>>, vector<2x256xf32>
    %cst_27 = arith.constant dense<0.000000e+00> : vector<2xf32>
    %61 = vector.multi_reduction <add>, %60, %cst_27 [1] : vector<2x256xf32> to vector<2xf32>
    %62 = vector.shape_cast %61 : vector<2xf32> to vector<2x1xf32>
    %cst_28 = arith.constant 2.560000e+02 : f32
    %63 = vector.broadcast %cst_28 : f32 to vector<2x1xf32>
    %64 = arith.divf %62, %63 : vector<2x1xf32>
    %65 = vector.broadcast %64 : vector<2x1xf32> to vector<2x256xf32>
    %66 = arith.subf %60, %65 : vector<2x256xf32>
    %c0_29 = arith.constant 0 : index
    %c0_30 = arith.constant 0 : index
    %67 = vector.load %arg1[%c0_29, %c0_30] : memref<2x1024xf32, #tpu.memory_space<vmem>>, vector<2x256xf32>
    %68 = vector.broadcast %4 : vector<2x1xf32> to vector<2x256xf32>
    %69 = arith.subf %67, %68 : vector<2x256xf32>
    %70 = arith.mulf %66, %69 : vector<2x256xf32>
    %cst_31 = arith.constant dense<0.000000e+00> : vector<2xf32>
    %71 = vector.multi_reduction <add>, %70, %cst_31 [1] : vector<2x256xf32> to vector<2xf32>
    %72 = vector.shape_cast %71 : vector<2xf32> to vector<2x1xf32>
    %cst_32 = arith.constant 0.00392156886 : f32
    %73 = vector.broadcast %cst_32 : f32 to vector<2x1xf32>
    %74 = arith.mulf %72, %73 : vector<2x1xf32>
    %c0_33 = arith.constant 0 : index
    %c256_34 = arith.constant 256 : index
    %75 = vector.load %arg1[%c0_33, %c256_34] : memref<2x1024xf32, #tpu.memory_space<vmem>>, vector<2x256xf32>
    %76 = vector.broadcast %16 : vector<2x1xf32> to vector<2x256xf32>
    %77 = arith.subf %75, %76 : vector<2x256xf32>
    %78 = arith.mulf %66, %77 : vector<2x256xf32>
    %cst_35 = arith.constant dense<0.000000e+00> : vector<2xf32>
    %79 = vector.multi_reduction <add>, %78, %cst_35 [1] : vector<2x256xf32> to vector<2xf32>
    %80 = vector.shape_cast %79 : vector<2xf32> to vector<2x1xf32>
    %cst_36 = arith.constant 0.00392156886 : f32
    %81 = vector.broadcast %cst_36 : f32 to vector<2x1xf32>
    %82 = arith.mulf %80, %81 : vector<2x1xf32>
    %c0_37 = arith.constant 0 : index
    %c512_38 = arith.constant 512 : index
    %83 = vector.load %arg1[%c0_37, %c512_38] : memref<2x1024xf32, #tpu.memory_space<vmem>>, vector<2x256xf32>
    %84 = vector.broadcast %36 : vector<2x1xf32> to vector<2x256xf32>
    %85 = arith.subf %83, %84 : vector<2x256xf32>
    %86 = arith.mulf %66, %85 : vector<2x256xf32>
    %cst_39 = arith.constant dense<0.000000e+00> : vector<2xf32>
    %87 = vector.multi_reduction <add>, %86, %cst_39 [1] : vector<2x256xf32> to vector<2xf32>
    %88 = vector.shape_cast %87 : vector<2xf32> to vector<2x1xf32>
    %cst_40 = arith.constant 0.00392156886 : f32
    %89 = vector.broadcast %cst_40 : f32 to vector<2x1xf32>
    %90 = arith.mulf %88, %89 : vector<2x1xf32>
    %91 = arith.mulf %66, %66 : vector<2x256xf32>
    %cst_41 = arith.constant dense<0.000000e+00> : vector<2xf32>
    %92 = vector.multi_reduction <add>, %91, %cst_41 [1] : vector<2x256xf32> to vector<2xf32>
    %93 = vector.shape_cast %92 : vector<2xf32> to vector<2x1xf32>
    %cst_42 = arith.constant 0.00392156886 : f32
    %94 = vector.broadcast %cst_42 : f32 to vector<2x1xf32>
    %95 = arith.mulf %93, %94 : vector<2x1xf32>
    %cst_43 = arith.constant 1.000000e-30 : f32
    %96 = vector.broadcast %cst_43 : f32 to vector<2x1xf32>
    %97 = arith.maximumf %11, %96 : vector<2x1xf32>
    %98 = math.sqrt %97 : vector<2x1xf32>
    %99 = arith.divf %26, %98 : vector<2x1xf32>
    %100 = arith.mulf %99, %99 : vector<2x1xf32>
    %101 = arith.subf %31, %100 : vector<2x1xf32>
    %cst_44 = arith.constant 1.000000e-30 : f32
    %102 = vector.broadcast %cst_44 : f32 to vector<2x1xf32>
    %103 = arith.maximumf %101, %102 : vector<2x1xf32>
    %104 = math.sqrt %103 : vector<2x1xf32>
    %105 = arith.divf %46, %98 : vector<2x1xf32>
    %106 = arith.mulf %105, %99 : vector<2x1xf32>
    %107 = arith.subf %54, %106 : vector<2x1xf32>
    %108 = arith.divf %107, %104 : vector<2x1xf32>
    %109 = arith.mulf %105, %105 : vector<2x1xf32>
    %110 = arith.subf %59, %109 : vector<2x1xf32>
    %111 = arith.mulf %108, %108 : vector<2x1xf32>
    %112 = arith.subf %110, %111 : vector<2x1xf32>
    %cst_45 = arith.constant 1.000000e-30 : f32
    %113 = vector.broadcast %cst_45 : f32 to vector<2x1xf32>
    %114 = arith.maximumf %112, %113 : vector<2x1xf32>
    %115 = math.sqrt %114 : vector<2x1xf32>
    %116 = arith.divf %74, %98 : vector<2x1xf32>
    %117 = arith.mulf %116, %99 : vector<2x1xf32>
    %118 = arith.subf %82, %117 : vector<2x1xf32>
    %119 = arith.divf %118, %104 : vector<2x1xf32>
    %120 = arith.mulf %116, %105 : vector<2x1xf32>
    %121 = arith.subf %90, %120 : vector<2x1xf32>
    %122 = arith.mulf %119, %108 : vector<2x1xf32>
    %123 = arith.subf %121, %122 : vector<2x1xf32>
    %124 = arith.divf %123, %115 : vector<2x1xf32>
    %125 = arith.mulf %116, %116 : vector<2x1xf32>
    %126 = arith.subf %95, %125 : vector<2x1xf32>
    %127 = arith.mulf %119, %119 : vector<2x1xf32>
    %128 = arith.subf %126, %127 : vector<2x1xf32>
    %129 = arith.mulf %124, %124 : vector<2x1xf32>
    %130 = arith.subf %128, %129 : vector<2x1xf32>
    %cst_46 = arith.constant 1.000000e-30 : f32
    %131 = vector.broadcast %cst_46 : f32 to vector<2x1xf32>
    %132 = arith.maximumf %130, %131 : vector<2x1xf32>
    %133 = math.sqrt %132 : vector<2x1xf32>
    %cst_47 = arith.constant 1.000000e+00 : f32
    %134 = vector.broadcast %cst_47 : f32 to vector<2x1xf32>
    %135 = arith.divf %134, %98 : vector<2x1xf32>
    %cst_48 = arith.constant 1.000000e+00 : f32
    %136 = vector.broadcast %cst_48 : f32 to vector<2x1xf32>
    %137 = arith.divf %136, %104 : vector<2x1xf32>
    %138 = arith.mulf %99, %135 : vector<2x1xf32>
    %cst_49 = arith.constant 0.000000e+00 : f32
    %139 = vector.broadcast %cst_49 : f32 to vector<2x1xf32>
    %140 = arith.subf %139, %138 : vector<2x1xf32>
    %141 = arith.mulf %140, %137 : vector<2x1xf32>
    %cst_50 = arith.constant 1.000000e+00 : f32
    %142 = vector.broadcast %cst_50 : f32 to vector<2x1xf32>
    %143 = arith.divf %142, %115 : vector<2x1xf32>
    %144 = arith.mulf %105, %135 : vector<2x1xf32>
    %145 = arith.mulf %108, %141 : vector<2x1xf32>
    %146 = arith.addf %144, %145 : vector<2x1xf32>
    %cst_51 = arith.constant 0.000000e+00 : f32
    %147 = vector.broadcast %cst_51 : f32 to vector<2x1xf32>
    %148 = arith.subf %147, %146 : vector<2x1xf32>
    %149 = arith.mulf %148, %143 : vector<2x1xf32>
    %150 = arith.mulf %108, %137 : vector<2x1xf32>
    %cst_52 = arith.constant 0.000000e+00 : f32
    %151 = vector.broadcast %cst_52 : f32 to vector<2x1xf32>
    %152 = arith.subf %151, %150 : vector<2x1xf32>
    %153 = arith.mulf %152, %143 : vector<2x1xf32>
    %cst_53 = arith.constant 1.000000e+00 : f32
    %154 = vector.broadcast %cst_53 : f32 to vector<2x1xf32>
    %155 = arith.divf %154, %133 : vector<2x1xf32>
    %156 = arith.mulf %116, %135 : vector<2x1xf32>
    %157 = arith.mulf %119, %141 : vector<2x1xf32>
    %158 = arith.addf %156, %157 : vector<2x1xf32>
    %159 = arith.mulf %124, %149 : vector<2x1xf32>
    %160 = arith.addf %158, %159 : vector<2x1xf32>
    %cst_54 = arith.constant 0.000000e+00 : f32
    %161 = vector.broadcast %cst_54 : f32 to vector<2x1xf32>
    %162 = arith.subf %161, %160 : vector<2x1xf32>
    %163 = arith.mulf %162, %155 : vector<2x1xf32>
    %164 = arith.mulf %119, %137 : vector<2x1xf32>
    %165 = arith.mulf %124, %153 : vector<2x1xf32>
    %166 = arith.addf %164, %165 : vector<2x1xf32>
    %cst_55 = arith.constant 0.000000e+00 : f32
    %167 = vector.broadcast %cst_55 : f32 to vector<2x1xf32>
    %168 = arith.subf %167, %166 : vector<2x1xf32>
    %169 = arith.mulf %168, %155 : vector<2x1xf32>
    %170 = arith.mulf %124, %143 : vector<2x1xf32>
    %cst_56 = arith.constant 0.000000e+00 : f32
    %171 = vector.broadcast %cst_56 : f32 to vector<2x1xf32>
    %172 = arith.subf %171, %170 : vector<2x1xf32>
    %173 = arith.mulf %172, %155 : vector<2x1xf32>
    %c0_57 = arith.constant 0 : index
    %c0_58 = arith.constant 0 : index
    %174 = vector.load %arg1[%c0_57, %c0_58] : memref<2x1024xf32, #tpu.memory_space<vmem>>, vector<2x256xf32>
    %175 = vector.broadcast %4 : vector<2x1xf32> to vector<2x256xf32>
    %176 = arith.subf %174, %175 : vector<2x256xf32>
    %177 = vector.broadcast %135 : vector<2x1xf32> to vector<2x256xf32>
    %178 = arith.mulf %177, %176 : vector<2x256xf32>
    %c0_59 = arith.constant 0 : index
    %c0_60 = arith.constant 0 : index
    %179 = vector.load %arg2[%c0_59, %c0_60] : memref<2x1024xf32, #tpu.memory_space<vmem>>, vector<2x256xf32>
    tpu.vector_store %arg2[%c0_59, %c0_60], %178 {strides = array<i32>} : memref<2x1024xf32, #tpu.memory_space<vmem>>, vector<2x256xf32>,
    %c0_61 = arith.constant 0 : index
    %c0_62 = arith.constant 0 : index
    %180 = vector.load %arg1[%c0_61, %c0_62] : memref<2x1024xf32, #tpu.memory_space<vmem>>, vector<2x256xf32>
    %181 = vector.broadcast %4 : vector<2x1xf32> to vector<2x256xf32>
    %182 = arith.subf %180, %181 : vector<2x256xf32>
    %183 = vector.broadcast %141 : vector<2x1xf32> to vector<2x256xf32>
    %184 = arith.mulf %183, %182 : vector<2x256xf32>
    %c0_63 = arith.constant 0 : index
    %c256_64 = arith.constant 256 : index
    %185 = vector.load %arg1[%c0_63, %c256_64] : memref<2x1024xf32, #tpu.memory_space<vmem>>, vector<2x256xf32>
    %186 = vector.broadcast %16 : vector<2x1xf32> to vector<2x256xf32>
    %187 = arith.subf %185, %186 : vector<2x256xf32>
    %188 = vector.broadcast %137 : vector<2x1xf32> to vector<2x256xf32>
    %189 = arith.mulf %188, %187 : vector<2x256xf32>
    %190 = arith.addf %184, %189 : vector<2x256xf32>
    %c0_65 = arith.constant 0 : index
    %c256_66 = arith.constant 256 : index
    %191 = vector.load %arg2[%c0_65, %c256_66] : memref<2x1024xf32, #tpu.memory_space<vmem>>, vector<2x256xf32>
    tpu.vector_store %arg2[%c0_65, %c256_66], %190 {strides = array<i32>} : memref<2x1024xf32, #tpu.memory_space<vmem>>, vector<2x256xf32>,
    %c0_67 = arith.constant 0 : index
    %c0_68 = arith.constant 0 : index
    %192 = vector.load %arg1[%c0_67, %c0_68] : memref<2x1024xf32, #tpu.memory_space<vmem>>, vector<2x256xf32>
    %193 = vector.broadcast %4 : vector<2x1xf32> to vector<2x256xf32>
    %194 = arith.subf %192, %193 : vector<2x256xf32>
    %195 = vector.broadcast %149 : vector<2x1xf32> to vector<2x256xf32>
    %196 = arith.mulf %195, %194 : vector<2x256xf32>
    %c0_69 = arith.constant 0 : index
    %c256_70 = arith.constant 256 : index
    %197 = vector.load %arg1[%c0_69, %c256_70] : memref<2x1024xf32, #tpu.memory_space<vmem>>, vector<2x256xf32>
    %198 = vector.broadcast %16 : vector<2x1xf32> to vector<2x256xf32>
    %199 = arith.subf %197, %198 : vector<2x256xf32>
    %200 = vector.broadcast %153 : vector<2x1xf32> to vector<2x256xf32>
    %201 = arith.mulf %200, %199 : vector<2x256xf32>
    %202 = arith.addf %196, %201 : vector<2x256xf32>
    %c0_71 = arith.constant 0 : index
    %c512_72 = arith.constant 512 : index
    %203 = vector.load %arg1[%c0_71, %c512_72] : memref<2x1024xf32, #tpu.memory_space<vmem>>, vector<2x256xf32>
    %204 = vector.broadcast %36 : vector<2x1xf32> to vector<2x256xf32>
    %205 = arith.subf %203, %204 : vector<2x256xf32>
    %206 = vector.broadcast %143 : vector<2x1xf32> to vector<2x256xf32>
    %207 = arith.mulf %206, %205 : vector<2x256xf32>
    %208 = arith.addf %202, %207 : vector<2x256xf32>
    %c0_73 = arith.constant 0 : index
    %c512_74 = arith.constant 512 : index
    %209 = vector.load %arg2[%c0_73, %c512_74] : memref<2x1024xf32, #tpu.memory_space<vmem>>, vector<2x256xf32>
    tpu.vector_store %arg2[%c0_73, %c512_74], %208 {strides = array<i32>} : memref<2x1024xf32, #tpu.memory_space<vmem>>, vector<2x256xf32>,
    %c0_75 = arith.constant 0 : index
    %c0_76 = arith.constant 0 : index
    %210 = vector.load %arg1[%c0_75, %c0_76] : memref<2x1024xf32, #tpu.memory_space<vmem>>, vector<2x256xf32>
    %211 = vector.broadcast %4 : vector<2x1xf32> to vector<2x256xf32>
    %212 = arith.subf %210, %211 : vector<2x256xf32>
    %213 = vector.broadcast %163 : vector<2x1xf32> to vector<2x256xf32>
    %214 = arith.mulf %213, %212 : vector<2x256xf32>
    %c0_77 = arith.constant 0 : index
    %c256_78 = arith.constant 256 : index
    %215 = vector.load %arg1[%c0_77, %c256_78] : memref<2x1024xf32, #tpu.memory_space<vmem>>, vector<2x256xf32>
    %216 = vector.broadcast %16 : vector<2x1xf32> to vector<2x256xf32>
    %217 = arith.subf %215, %216 : vector<2x256xf32>
    %218 = vector.broadcast %169 : vector<2x1xf32> to vector<2x256xf32>
    %219 = arith.mulf %218, %217 : vector<2x256xf32>
    %220 = arith.addf %214, %219 : vector<2x256xf32>
    %c0_79 = arith.constant 0 : index
    %c512_80 = arith.constant 512 : index
    %221 = vector.load %arg1[%c0_79, %c512_80] : memref<2x1024xf32, #tpu.memory_space<vmem>>, vector<2x256xf32>
    %222 = vector.broadcast %36 : vector<2x1xf32> to vector<2x256xf32>
    %223 = arith.subf %221, %222 : vector<2x256xf32>
    %224 = vector.broadcast %173 : vector<2x1xf32> to vector<2x256xf32>
    %225 = arith.mulf %224, %223 : vector<2x256xf32>
    %226 = arith.addf %220, %225 : vector<2x256xf32>
    %c0_81 = arith.constant 0 : index
    %c768_82 = arith.constant 768 : index
    %227 = vector.load %arg1[%c0_81, %c768_82] : memref<2x1024xf32, #tpu.memory_space<vmem>>, vector<2x256xf32>
    %228 = vector.broadcast %64 : vector<2x1xf32> to vector<2x256xf32>
    %229 = arith.subf %227, %228 : vector<2x256xf32>
    %230 = vector.broadcast %155 : vector<2x1xf32> to vector<2x256xf32>
    %231 = arith.mulf %230, %229 : vector<2x256xf32>
    %232 = arith.addf %226, %231 : vector<2x256xf32>
    %c0_83 = arith.constant 0 : index
    %c768_84 = arith.constant 768 : index
    %233 = vector.load %arg2[%c0_83, %c768_84] : memref<2x1024xf32, #tpu.memory_space<vmem>>, vector<2x256xf32>
    tpu.vector_store %arg2[%c0_83, %c768_84], %232 {strides = array<i32>} : memref<2x1024xf32, #tpu.memory_space<vmem>>, vector<2x256xf32>,
    return
  }
  func.func @transform_0(%arg0: i32) -> (i32, i32) {
    %c0_i32 = arith.constant 0 : i32
    %c0_i32_0 = arith.constant 0 : i32
    return %arg0, %c0_i32 : i32, i32
  }
  func.func @transform_1(%arg0: i32) -> (i32, i32) {
    %c0_i32 = arith.constant 0 : i32
    %c0_i32_0 = arith.constant 0 : i32
    return %arg0, %c0_i32 : i32, i32
  }
}

</mosaic_0001>

<bundles_post_ra>
// kernel: tpu_custom_call.1
= control target key start
LH: loop header
LB: loop body
LE: loop exit
PB: predicated region body
PF: predicated region fallthrough
CT: control target
= control target key end

     0   :  { %6 = vsyncpa [#allocation3], 0  ;;  %s853_s0 = inlined_call_operand.hbm [shape: f32[2,1024], index: 0, kind: input, shape index: {}]   ;;  %s854_s1 = inlined_call_operand.hbm [shape: f32[2,1024], index: 1, kind: output, shape index: {}]  }
   0x1   :  { %7 = vsyncpa [#allocation4], 0  ;;  %s702_s6 = smov [#allocation2]   ;;  %s654_s10 = scalar_lea.hbm %s853_s0, 256 }
   0x2   :  { %s14_s7 = sshll.u32 %s702_s6, 4  ;;  %p655_p0 = scmp.ne.s32.totalorder %s853_s0, %s654_s10  ;;  %s15_s7 = int_to_ptr.vmem [resolvable:$true] %s14_s7 }
   0x3   :  { %p658_p1 = scmp.lt.u32.totalorder %s654_s10, %s853_s0 }
   0x5   :  { %p660_p2 = pnand %p658_p1, %p655_p0 }
   0x7   :  { %663 = shalt.err (!%p660_p2)
}
   0x8   :  { %s664_s15 = scalar_lea.vmem %s15_s7, 256  ;;  %p669_p4 = scmp.lt.s32.totalorder %s15_s7, %s15_s7 }
   0x9   :  { %p665_p3 = scmp.ne.s32.totalorder %s15_s7, %s664_s15  ;;  %p670_p5 = scmp.lt.s32.totalorder %s664_s15, %s664_s15 }
   0xb   :  { %p671_p6 = por %p670_p5, %p669_p4 }
   0xd   :  { %p672_p7 = pnand %p671_p6, %p665_p3 }
   0xf   :  { %675 = shalt.err (!%p672_p7)
}
  0x10   :  { %17 = dma.hbm_to_vmem [thread:$0]  %s853_s0, 256, %s15_s7, [#allocation3]  }
  0x11   :  { %698 = dma.done.wait [#allocation3], 256  }
  0x12   :  { %699 = vsyncadd [#allocation3], 4294967040  ;;  %v26_v0 = vlaneseq  ;;  %v703_v1 = vmov 1983009808   ;;  %vm33_vm0 = vcmask 1041408   ;;  %s705_s0 = smov [#allocation5]  }
  0x13   :  { %v24_v2 = vunpack.c.l.s4 %v703_v1  ;;  %v133_v6 = vld [vmem:[#allocation2 + $0x8] sm:$0xf]  ;;  %v21_v7 = vld [vmem:[#allocation2] sm:$0xf]  ;;  %v215_v8 = vld [vmem:[#allocation2 + $0xc] sm:$0xf] }
  0x14   :  { %v27_v3 = vshrl.u32 %v26_v0, 7  ;;  %v69_v12 = vld [vmem:[#allocation2 + $0x4] sm:$0xf]  ;;  %v704_v30 = vmov 269488144   ;;  %s621_s18 = sshll.u32 %s705_s0, 4  ;;  %s622_s18 = int_to_ptr.vmem [resolvable:$true] %s621_s18 }
  0x15   :  { %v25_v4 = vunpack.c.0.s8 %v24_v2  ;;  %v43_v31 = vunpack.c.l.s4 %v704_v30  ;;  %s676_s19 = scalar_lea.vmem %s622_s18, 256  ;;  %p681_p9 = scmp.lt.s32.totalorder %s622_s18, %s622_s18 }
  0x16   :  { %p677_p8 = scmp.ne.s32.totalorder %s622_s18, %s676_s19  ;;  %p682_p10 = scmp.lt.s32.totalorder %s676_s19, %s676_s19 }
  0x17   :  { %v728_v5 = vsub.s32 %v25_v4, %v27_v3  ;;  %v44_v32 = vunpack.c.0.s8 %v43_v31 }
  0x18   :  { %p683_p11 = por %p682_p10, %p681_p9 }
  0x19   :  { %v141_v9 = vrot.slane %v133_v6, %v728_v5  ;;  %v29_v10 = vrot.slane %v21_v7, %v728_v5  ;;  %v223_v11 = vrot.slane %v215_v8, %v728_v5  ;;  %v77_v13 = vrot.slane %v69_v12, %v728_v5 }
  0x1a   :  { %v47_v33 = vsub.s32 %v44_v32, %v27_v3  ;;  %p684_p12 = pnand %p683_p11, %p677_p8 }
  0x1b   :  { %v142_v14 = vcombine.high %v141_v9, %v141_v9  ;;  %v145_v15 = vsel %vm33_vm0, %v141_v9, 0.0  ;;  %v30_v16 = vcombine.high %v29_v10, %v29_v10  ;;  %v34_v17 = vsel %vm33_vm0, %v29_v10, 0.0 }
  0x1c   :  { %v224_v18 = vcombine.high %v223_v11, %v223_v11  ;;  %v78_v19 = vcombine.high %v77_v13, %v77_v13  ;;  %v227_v22 = vsel %vm33_vm0, %v223_v11, 0.0  ;;  %v81_v23 = vsel %vm33_vm0, %v77_v13, 0.0 }
  0x1d   :  { %v146_v20 = vsel %vm33_vm0, %v142_v14, 0.0  ;;  %v35_v21 = vsel %vm33_vm0, %v30_v16, 0.0 }
  0x1e   :  { %v147_v24 = vadd.f32 %v146_v20, %v145_v15  ;;  %v36_v25 = vadd.f32 %v35_v21, %v34_v17  ;;  %v228_v26 = vsel %vm33_vm0, %v224_v18, 0.0  ;;  %v82_v27 = vsel %vm33_vm0, %v78_v19, 0.0 }
  0x1f   :  { %v229_v28 = vadd.f32 %v228_v26, %v227_v22  ;;  %v83_v29 = vadd.f32 %v82_v27, %v81_v23 }
  0x20   :  { %148 = vadd.xlane.f32.xlu1 %v147_v24  ;;  %37 = vadd.xlane.f32.xlu0 %v36_v25 }
  0x24   :  { %230 = vadd.xlane.f32.xlu1 %v229_v28  ;;  %84 = vadd.xlane.f32.xlu0 %v83_v29 }
  0xad   :  { %v149_v34 = vpop.xlane.xlu1 %148  ;;  %v38_v35 = vpop.xlane.xlu0 %37 }
  0xae   :  { %v150_v36 = vmul.f32 0.00390625, %v149_v34  ;;  %v40_v37 = vmul.f32 0.00390625, %v38_v35 }
  0xb0   :  { %v742_v38 = vrot.slane %v40_v37, %v47_v33  ;;  %v744_v41 = vrot.slane %v150_v36, %v47_v33 }
  0xb1   :  { %v231_v39 = vpop.xlane.xlu1 %230  ;;  %v85_v40 = vpop.xlane.xlu0 %84 }
  0xb2   :  { %v747_v42 = vsub.f32 %v21_v7, %v742_v38  ;;  %v232_v43 = vmul.f32 0.00390625, %v231_v39  ;;  %v86_v44 = vmul.f32 0.00390625, %v85_v40  ;;  %v160_v46 = vsub.f32 %v133_v6, %v744_v41 }
  0xb4   :  { %v51_v45 = vmul.f32 %v747_v42, %v747_v42  ;;  %v752_v47 = vrot.slane %v232_v43, %v47_v33  ;;  %v754_v48 = vrot.slane %v86_v44, %v47_v33  ;;  %v161_v54 = vmul.f32 %v160_v46, %v747_v42 }
  0xb5   :  { %v197_v1 = vmul.f32 %v160_v46, %v160_v46 }
  0xb6   :  { %v59_v49 = vrot.slane %v51_v45, %v728_v5  ;;  %v96_v50 = vsub.f32 %v69_v12, %v754_v48  ;;  %v242_v52 = vsub.f32 %v215_v8, %v752_v47  ;;  %v169_v63 = vrot.slane %v161_v54, %v728_v5 }
  0xb7   :  { %v205_v14 = vrot.slane %v197_v1, %v728_v5 }
  0xb8   :  { %v60_v51 = vcombine.high %v59_v49, %v59_v49  ;;  %v115_v53 = vmul.f32 %v96_v50, %v96_v50  ;;  %v63_v55 = vsel %vm33_vm0, %v59_v49, 0.0  ;;  %v97_v57 = vmul.f32 %v96_v50, %v747_v42 }
  0xb9   :  { %v179_v58 = vmul.f32 %v160_v46, %v96_v50  ;;  %v243_v0 = vmul.f32 %v242_v52, %v747_v42  ;;  %v261_v6 = vmul.f32 %v242_v52, %v96_v50  ;;  %v170_v10 = vcombine.high %v169_v63, %v169_v63 }
  0xba   :  { %v64_v56 = vsel %vm33_vm0, %v60_v51, 0.0  ;;  %v123_v60 = vrot.slane %v115_v53, %v728_v5  ;;  %v105_v61 = vrot.slane %v97_v57, %v728_v5  ;;  %v206_v21 = vcombine.high %v205_v14, %v205_v14 }
  0xbb   :  { %v65_v59 = vadd.f32 %v64_v56, %v63_v55  ;;  %v187_v62 = vrot.slane %v179_v58, %v728_v5  ;;  %v251_v13 = vrot.slane %v243_v0, %v728_v5  ;;  %v174_v19 = vsel %vm33_vm0, %v170_v10, 0.0 }
  0xbc   :  { %v124_v2 = vcombine.high %v123_v60, %v123_v60  ;;  %v127_v3 = vsel %vm33_vm0, %v123_v60, 0.0  ;;  %v106_v4 = vcombine.high %v105_v61, %v105_v61  ;;  %v109_v7 = vsel %vm33_vm0, %v105_v61, 0.0 }
  0xbd   :  { %66 = vadd.xlane.f32.xlu0 %v65_v59  ;;  %v188_v8 = vcombine.high %v187_v62, %v187_v62  ;;  %v191_v9 = vsel %vm33_vm0, %v187_v62, 0.0  ;;  %v252_v20 = vcombine.high %v251_v13, %v251_v13  ;;  %v269_v22 = vrot.slane %v261_v6, %v728_v5 }
  0xbe   :  { %v128_v11 = vsel %vm33_vm0, %v124_v2, 0.0  ;;  %v110_v12 = vsel %vm33_vm0, %v106_v4, 0.0  ;;  %v279_v23 = vmul.f32 %v242_v52, %v160_v46  ;;  %v173_v24 = vsel %vm33_vm0, %v169_v63, 0.0 }
  0xbf   :  { %v129_v15 = vadd.f32 %v128_v11, %v127_v3  ;;  %v111_v16 = vadd.f32 %v110_v12, %v109_v7  ;;  %v192_v17 = vsel %vm33_vm0, %v188_v8, 0.0  ;;  %v209_v25 = vsel %vm33_vm0, %v205_v14, 0.0 }
  0xc0   :  { %v193_v18 = vadd.f32 %v192_v17, %v191_v9  ;;  %v297_v26 = vmul.f32 %v242_v52, %v242_v52  ;;  %v175_v27 = vadd.f32 %v174_v19, %v173_v24  ;;  %v210_v28 = vsel %vm33_vm0, %v206_v21, 0.0  ;;  %v432_v21 = vld [vmem:[#allocation2] sm:$0xf]  ;;  %v447_v24 = vld [vmem:[#allocation2 + $0x4] sm:$0xf] }
  0xc1   :  { %130 = vadd.xlane.f32.xlu0 %v129_v15  ;;  %112 = vadd.xlane.f32.xlu1 %v111_v16  ;;  %v270_v29 = vcombine.high %v269_v22, %v269_v22  ;;  %v256_v30 = vsel %vm33_vm0, %v252_v20, 0.0  ;;  %v287_v31 = vrot.slane %v279_v23, %v728_v5  ;;  %v255_v33 = vsel %vm33_vm0, %v251_v13, 0.0 }
  0xc2   :  { %v305_v32 = vrot.slane %v297_v26, %v728_v5  ;;  %v211_v34 = vadd.f32 %v210_v28, %v209_v25  ;;  %v273_v35 = vsel %vm33_vm0, %v269_v22, 0.0  ;;  %v257_v43 = vadd.f32 %v256_v30, %v255_v33 }
  0xc3   :  { %v274_v36 = vsel %vm33_vm0, %v270_v29, 0.0  ;;  %v288_v37 = vcombine.high %v287_v31, %v287_v31  ;;  %v291_v39 = vsel %vm33_vm0, %v287_v31, 0.0  ;;  %v414_v61 = vrot.slane %v747_v42, %v728_v5 }
  0xc4   :  { %v306_v40 = vcombine.high %v305_v32, %v305_v32  ;;  %v275_v45 = vadd.f32 %v274_v36, %v273_v35  ;;  %v309_v49 = vsel %vm33_vm0, %v305_v32, 0.0  ;;  %v433_v25 = vsub.f32 %v432_v21, %v742_v38 }
  0xc5   :  { %194 = vadd.xlane.f32.xlu0 %v193_v18  ;;  %176 = vadd.xlane.f32.xlu1 %v175_v27  ;;  %v292_v44 = vsel %vm33_vm0, %v288_v37, 0.0  ;;  %v415_v0 = vcombine.high %v414_v61, %v414_v61  ;;  %v448_v30 = vsub.f32 %v447_v24, %v754_v48 }
  0xc6   :  { %v293_v46 = vadd.f32 %v292_v44, %v291_v39  ;;  %v310_v50 = vsel %vm33_vm0, %v306_v40, 0.0  ;;  %v441_v33 = vrot.slane %v433_v25, %v728_v5 }
  0xc7   :  { %v311_v51 = vadd.f32 %v310_v50, %v309_v49 }
  0xc8   :  { %v442_v49 = vcombine.high %v441_v33, %v441_v33 }
  0xc9   :  { %258 = vadd.xlane.f32.xlu0 %v257_v43  ;;  %212 = vadd.xlane.f32.xlu1 %v211_v34  ;;  %v456_v43 = vrot.slane %v448_v30, %v728_v5 }
  0xcd   :  { %276 = vadd.xlane.f32.xlu1 %v275_v45  ;;  %294 = vadd.xlane.f32.xlu0 %v293_v46 }
  0xd1   :  { %312 = vadd.xlane.f32.xlu1 %v311_v51 }
 0x14a   :  { %v67_v52 = vpop.xlane.xlu0 %66 }
 0x14b   :  { %v68_v53 = vmul.f32 0.003921569, %v67_v52  ;;  %v457_v52 = vcombine.high %v456_v43, %v456_v43 }
 0x14d   :  { %v315_v54 = vmax.f32 %v68_v53, 1e-30 }
 0x14e   :  { %v113_v60 = vpop.xlane.xlu1 %112  ;;  %v131_v2 = vpop.xlane.xlu0 %130 }
 0x14f   :  { %638 = vrsqrt.f32 %v315_v54  ;;  %vm318_vm1 = vcmp.eq.f32.partialorder %v315_v54, inf  ;;  %v321_v57 = vand.u32 2147483648, %v315_v54  ;;  %vm320_vm2 = vcmp.eq.f32.partialorder %v315_v54, 0.0 }
 0x150   :  { %v114_v62 = vmul.f32 0.003921569, %v113_v60  ;;  %v132_v7 = vmul.f32 0.003921569, %v131_v2 }
 0x152   :  { %v195_v11 = vpop.xlane.xlu0 %194  ;;  %v177_v42 = vpop.xlane.xlu1 %176 }
 0x153   :  { %v178_v19 = vmul.f32 0.003921569, %v177_v42  ;;  %v196_v31 = vmul.f32 0.003921569, %v195_v11 }
 0x156   :  { %v259_v14 = vpop.xlane.xlu0 %258  ;;  %v213_v17 = vpop.xlane.xlu1 %212 }
 0x157   :  { %v260_v20 = vmul.f32 0.003921569, %v259_v14  ;;  %v214_v34 = vmul.f32 0.003921569, %v213_v17 }
 0x159   :  { %v639_v55 = vpop.eup %638 }
 0x15a   :  { %v317_v56 = vmul.f32 %v639_v55, %v315_v54  ;;  %v277_v26 = vpop.xlane.xlu1 %276 }
 0x15b   :  { %v278_v32 = vmul.f32 0.003921569, %v277_v26 }
 0x15c   :  { %v319_v58 = vsel %vm318_vm1, %v315_v54, %v317_v56 }
 0x15d   :  { %v322_v59 = vsel %vm320_vm2, %v321_v57, %v319_v58 }
 0x15e   :  { %640 = vrcp.f32 %v322_v59 }
 0x168   :  { %v793_v63 = vpop.eup %640 }
 0x169   :  { %v324_v1 = vmul.f32 %v793_v63, %v114_v62  ;;  %v418_v3 = vmul.f32 %v793_v63, %v414_v61  ;;  %v419_v4 = vmul.f32 %v793_v63, %v415_v0  ;;  %v335_v22 = vmul.f32 %v793_v63, %v178_v19 }
 0x16a   :  { %v800_v23 = vmul.f32 %v793_v63, %v260_v20 }
 0x16b   :  { %v325_v6 = vmul.f32 %v324_v1, %v324_v1  ;;  %v422_v9 = vcombine.low %v418_v3, %v419_v4  ;;  %v378_v27 = vmul.f32 %v793_v63, %v324_v1  ;;  %v336_v28 = vmul.f32 %v335_v22, %v324_v1 }
 0x16c   :  { %v353_v29 = vmul.f32 %v800_v23, %v324_v1  ;;  %v340_v37 = vmul.f32 %v335_v22, %v335_v22  ;;  %v382_v11 = vmul.f32 %v793_v63, %v335_v22  ;;  %v356_v42 = vmul.f32 %v800_v23, %v335_v22 }
 0x16d   :  { %v326_v8 = vsub.f32 %v132_v7, %v325_v6  ;;  %630 = vst.sshfl [vmem:[#allocation5] sm:$0x33 pattern:$0x76325410] %v422_v9  ;;  %v379_v35 = vsub.f32 0.0, %v378_v27  ;;  %v337_v36 = vsub.f32 %v196_v31, %v336_v28  ;;  %v295_v6 = vpop.xlane.xlu0 %294  ;;  %v362_v21 = vmul.f32 %v800_v23, %v800_v23 }
 0x16e   :  { %v354_v39 = vsub.f32 %v278_v32, %v353_v29  ;;  %v341_v50 = vsub.f32 %v214_v34, %v340_v37  ;;  %v508_v7 = vld [vmem:[#allocation2 + $0x8] sm:$0xf]  ;;  %v491_v9 = vld [vmem:[#allocation2 + $0x4] sm:$0xf] }
 0x16f   :  { %v327_v10 = vmax.f32 %v326_v8, 1e-30  ;;  %v476_v8 = vld [vmem:[#allocation2] sm:$0xf] }
 0x170   :  { %v477_v14 = vsub.f32 %v476_v8, %v742_v38  ;;  %v552_v8 = vld [vmem:[#allocation2 + $0x4] sm:$0xf] }
 0x171   :  { %642 = vrsqrt.f32 %v327_v10  ;;  %vm330_vm3 = vcmp.eq.f32.partialorder %v327_v10, inf  ;;  %v333_v15 = vand.u32 2147483648, %v327_v10  ;;  %vm332_vm4 = vcmp.eq.f32.partialorder %v327_v10, 0.0 }
 0x172   :  { %v485_v22 = vrot.slane %v477_v14, %v728_v5  ;;  %v553_v14 = vsub.f32 %v552_v8, %v754_v48 }
 0x17b   :  { %v643_v12 = vpop.eup %642 }
 0x17c   :  { %v329_v13 = vmul.f32 %v643_v12, %v327_v10  ;;  %v296_v12 = vmul.f32 0.003921569, %v295_v6  ;;  %v537_v6 = vld [vmem:[#allocation2] sm:$0xf] }
 0x17e   :  { %v331_v16 = vsel %vm330_vm3, %v327_v10, %v329_v13  ;;  %v509_v13 = vsub.f32 %v508_v7, %v744_v41  ;;  %v357_v24 = vsub.f32 %v296_v12, %v356_v42  ;;  %v586_v7 = vld [vmem:[#allocation2 + $0xc] sm:$0xf]  ;;  %v538_v12 = vsub.f32 %v537_v6, %v742_v38 }
 0x17f   :  { %v334_v18 = vsel %vm332_vm4, %v333_v15, %v331_v16  ;;  %v492_v15 = vsub.f32 %v491_v9, %v754_v48  ;;  %v313_v16 = vpop.xlane.xlu1 %312 }
 0x180   :  { %644 = vrcp.f32 %v334_v18  ;;  %v314_v20 = vmul.f32 0.003921569, %v313_v16  ;;  %v517_v25 = vrot.slane %v509_v13, %v728_v5  ;;  %v587_v13 = vsub.f32 %v586_v7, %v752_v47 }
 0x181   :  { %v500_v26 = vrot.slane %v492_v15, %v728_v5 }
 0x182   :  { %v363_v32 = vsub.f32 %v314_v20, %v362_v21 }
 0x183   :  { %v501_v37 = vcombine.high %v500_v26, %v500_v26 }
 0x18a   :  { %v645_v40 = vpop.eup %644 }
 0x18b   :  { %v808_v44 = vmul.f32 %v645_v40, %v379_v35  ;;  %v339_v45 = vmul.f32 %v645_v40, %v337_v36  ;;  %v810_v46 = vmul.f32 %v645_v40, %v354_v39  ;;  %v460_v55 = vmul.f32 %v645_v40, %v456_v43 }
 0x18c   :  { %v461_v58 = vmul.f32 %v645_v40, %v457_v52  ;;  %v486_v36 = vcombine.high %v485_v22, %v485_v22  ;;  %v518_v39 = vcombine.high %v517_v25, %v517_v25 }
 0x18d   :  { %v342_v51 = vmul.f32 %v339_v45, %v339_v45  ;;  %v399_v53 = vmul.f32 %v645_v40, %v810_v46  ;;  %v445_v54 = vmul.f32 %v441_v33, %v808_v44  ;;  %v446_v57 = vmul.f32 %v442_v49, %v808_v44 }
 0x18e   :  { %v383_v10 = vmul.f32 %v808_v44, %v339_v45  ;;  %v387_v18 = vmul.f32 %v645_v40, %v339_v45  ;;  %v358_v19 = vmul.f32 %v810_v46, %v339_v45  ;;  %v364_v29 = vmul.f32 %v810_v46, %v810_v46 }
 0x18f   :  { %v343_v56 = vsub.f32 %v341_v50, %v342_v51  ;;  %v462_v59 = vadd.f32 %v460_v55, %v445_v54  ;;  %v463_v61 = vadd.f32 %v461_v58, %v446_v57 }
 0x190   :  { %v384_v17 = vadd.f32 %v383_v10, %v382_v11  ;;  %v388_v28 = vsub.f32 0.0, %v387_v18  ;;  %v359_v30 = vsub.f32 %v357_v24, %v358_v19  ;;  %v365_v40 = vsub.f32 %v363_v32, %v364_v29  ;;  %v569_v10 = vld [vmem:[#allocation2 + $0x8] sm:$0xf] }
 0x191   :  { %v344_v60 = vmax.f32 %v343_v56, 1e-30  ;;  %v466_v62 = vcombine.low %v462_v59, %v463_v61  ;;  %v392_v11 = vmul.f32 %v793_v63, %v800_v23  ;;  %v570_v16 = vsub.f32 %v569_v10, %v744_v41 }
 0x192   :  { %v385_v27 = vsub.f32 0.0, %v384_v17  ;;  %v561_v19 = vrot.slane %v553_v14, %v728_v5 }
 0x193   :  { %646 = vrsqrt.f32 %v344_v60  ;;  %631 = vst.sshfl [vmem:[#allocation5 + $0x4] sm:$0x33 pattern:$0x76325410] %v466_v62  ;;  %vm347_vm5 = vcmp.eq.f32.partialorder %v344_v60, inf  ;;  %v350_v2 = vand.u32 2147483648, %v344_v60  ;;  %v578_v63 = vrot.slane %v570_v16, %v728_v5 }
 0x194   :  { %vm349_vm6 = vcmp.eq.f32.partialorder %v344_v60, 0.0  ;;  %v562_v48 = vcombine.high %v561_v19, %v561_v19 }
 0x19d   :  { %v647_v0 = vpop.eup %646 }
 0x19e   :  { %v346_v1 = vmul.f32 %v647_v0, %v344_v60 }
 0x1a0   :  { %v348_v3 = vsel %vm347_vm5, %v344_v60, %v346_v1 }
 0x1a1   :  { %v351_v4 = vsel %vm349_vm6, %v350_v2, %v348_v3 }
 0x1a2   :  { %648 = vrcp.f32 %v351_v4 }
 0x1ac   :  { %v649_v31 = vpop.eup %648 }
 0x1ad   :  { %v386_v33 = vmul.f32 %v649_v31, %v385_v27  ;;  %v389_v34 = vmul.f32 %v649_v31, %v388_v28  ;;  %v361_v35 = vmul.f32 %v649_v31, %v359_v30  ;;  %v521_v58 = vmul.f32 %v649_v31, %v517_v25 }
 0x1ae   :  { %v522_v59 = vmul.f32 %v649_v31, %v518_v39  ;;  %v579_v27 = vcombine.high %v578_v63, %v578_v63 }
 0x1af   :  { %v366_v43 = vmul.f32 %v361_v35, %v361_v35  ;;  %v400_v45 = vmul.f32 %v389_v34, %v361_v35  ;;  %v489_v49 = vmul.f32 %v485_v22, %v386_v33  ;;  %v490_v50 = vmul.f32 %v486_v36, %v386_v33 }
 0x1b0   :  { %v504_v51 = vmul.f32 %v500_v26, %v389_v34  ;;  %v505_v52 = vmul.f32 %v501_v37, %v389_v34  ;;  %v395_v42 = vmul.f32 %v386_v33, %v361_v35  ;;  %v404_v18 = vmul.f32 %v649_v31, %v361_v35 }
 0x1b1   :  { %v367_v54 = vsub.f32 %v365_v40, %v366_v43  ;;  %v401_v55 = vadd.f32 %v400_v45, %v399_v53  ;;  %v393_v53 = vmul.f32 %v808_v44, %v810_v46  ;;  %v546_v44 = vrot.slane %v538_v12, %v728_v5 }
 0x1b2   :  { %v506_v56 = vadd.f32 %v504_v51, %v489_v49  ;;  %v507_v57 = vadd.f32 %v505_v52, %v490_v50  ;;  %v595_v46 = vrot.slane %v587_v13, %v728_v5  ;;  %v405_v38 = vsub.f32 0.0, %v404_v18 }
 0x1b3   :  { %v368_v60 = vmax.f32 %v367_v54, 1e-30  ;;  %v394_v15 = vadd.f32 %v393_v53, %v392_v11  ;;  %v402_v20 = vsub.f32 0.0, %v401_v55  ;;  %v547_v47 = vcombine.high %v546_v44, %v546_v44 }
 0x1b4   :  { %v523_v61 = vadd.f32 %v521_v58, %v506_v56  ;;  %v524_v62 = vadd.f32 %v522_v59, %v507_v57  ;;  %v596_v24 = vcombine.high %v595_v46, %v595_v46 }
 0x1b5   :  { %650 = vrsqrt.f32 %v368_v60  ;;  %vm371_vm7 = vcmp.eq.f32.partialorder %v368_v60, inf  ;;  %v374_v3 = vand.u32 2147483648, %v368_v60  ;;  %vm373_vm8 = vcmp.eq.f32.partialorder %v368_v60, 0.0 }
 0x1b6   :  { %v527_v0 = vcombine.low %v523_v61, %v524_v62  ;;  %v396_v17 = vadd.f32 %v395_v42, %v394_v15 }
 0x1b8   :  { %632 = vst.sshfl [vmem:[#allocation5 + $0x8] sm:$0x33 pattern:$0x76325410] %v527_v0  ;;  %v397_v23 = vsub.f32 0.0, %v396_v17 }
 0x1bf   :  { %v651_v1 = vpop.eup %650 }
 0x1c0   :  { %v370_v2 = vmul.f32 %v651_v1, %v368_v60 }
 0x1c2   :  { %v372_v4 = vsel %vm371_vm7, %v368_v60, %v370_v2 }
 0x1c3   :  { %v375_v9 = vsel %vm373_vm8, %v374_v3, %v372_v4 }
 0x1c4   :  { %652 = vrcp.f32 %v375_v9 }
 0x1ce   :  { %v653_v21 = vpop.eup %652 }
 0x1cf   :  { %v398_v25 = vmul.f32 %v653_v21, %v397_v23  ;;  %v403_v22 = vmul.f32 %v653_v21, %v402_v20  ;;  %v406_v41 = vmul.f32 %v653_v21, %v405_v38  ;;  %v599_v26 = vmul.f32 %v653_v21, %v595_v46 }
 0x1d0   :  { %v600_v28 = vmul.f32 %v653_v21, %v596_v24 }
 0x1d1   :  { %v550_v29 = vmul.f32 %v546_v44, %v398_v25  ;;  %v551_v30 = vmul.f32 %v547_v47, %v398_v25  ;;  %v565_v31 = vmul.f32 %v561_v19, %v403_v22  ;;  %v566_v32 = vmul.f32 %v562_v48, %v403_v22 }
 0x1d2   :  { %v582_v33 = vmul.f32 %v578_v63, %v406_v41  ;;  %v583_v34 = vmul.f32 %v579_v27, %v406_v41 }
 0x1d3   :  { %v567_v5 = vadd.f32 %v565_v31, %v550_v29  ;;  %v568_v35 = vadd.f32 %v566_v32, %v551_v30 }
 0x1d5   :  { %v584_v36 = vadd.f32 %v582_v33, %v567_v5  ;;  %v585_v37 = vadd.f32 %v583_v34, %v568_v35 }
 0x1d7   :  { %v601_v39 = vadd.f32 %v599_v26, %v584_v36  ;;  %v602_v40 = vadd.f32 %v600_v28, %v585_v37 }
 0x1d9   :  { %v605_v43 = vcombine.low %v601_v39, %v602_v40 }
 0x1db   :  { %633 = vst.sshfl [vmem:[#allocation5 + $0xc] sm:$0x33 pattern:$0x76325410] %v605_v43 }
 0x1dc   :  { %687 = shalt.err (!%p684_p12)
}
 0x1dd   :  { %s688_s22 = scalar_lea.hbm %s854_s1, 256 }
 0x1de   :  { %p689_p13 = scmp.ne.s32.totalorder %s854_s1, %s688_s22  ;;  %p692_p0 = scmp.lt.u32.totalorder %s688_s22, %s854_s1 }
 0x1e0   :  { %p694_p1 = pnand %p692_p0, %p689_p13 }
 0x1e2   :  { %697 = shalt.err (!%p694_p1)
}
 0x1e3   :  { %624 = dma.vmem_to_hbm [thread:$0]  %s622_s18, 256, %s854_s1, [#allocation4]  }
 0x1e4   :  { %700 = dma.done.wait [#allocation4], 256  }
 0x1e5   :  { %701 = vsyncadd [#allocation4], 4294967040 }
 0x1e6   :  { %628 = vsyncpa [#allocation3], 1 }
 0x1e7   :  { %629 = vsyncpa [#allocation4], 1 }

</bundles_post_ra>
